<compile_context>
chip_gen: v5e
topology: v5e:2x2
jax: 0.10.0
libtpu: 0.0.40
codegen_flags: <defaults>
</compile_context>

<pallas_src>
import jax
import jax.numpy as jnp
from jax.experimental import pallas as pl
from jax.experimental.pallas import tpu as pltpu


_WEIGHT_BLOCK_CAP = 1 << 20          # replicated weight bytes per VMEM buffer


def _projection_kernel(p_ref, w_ref, b_ref, o_ref):
    # p_ref: (tm, g*K)  packed patches tile (g tokens per row), bf16/f32
    # w_ref: (g*K, tn)  column stripe of the block-diagonal projection weight
    # b_ref: (1, tn)    bias stripe (bias tiled g times), f32
    # o_ref: (tm, tn)   packed output tokens tile (lane-dense stores)
    acc = jnp.dot(p_ref[...], w_ref[...], preferred_element_type=jnp.float32)
    o_ref[...] = (acc + b_ref[...]).astype(o_ref.dtype)


def _pack_factor(K, E, w_itemsize):
    """Tokens packed per kernel row so the kernel's last dims are lane-dense.

    g is grown only as far as lane density needs (output width >= 128 lanes
    and, when cheap, an exact multiple of 128; input width >= 128 lanes) and
    only while the replicated block-diagonal weight stays under
    _WEIGHT_BLOCK_CAP bytes per buffer: MXU work scales with g and the
    replicated weight scales with g**2, and the kernel is HBM-bound anyway.
    """
    def w_bytes(gg):
        return (gg * K) * (gg * E) * w_itemsize

    g = 1
    if E < 128:
        g = -(-128 // E)                      # lane-dense output
        if (g * E) % 128 != 0:                # prefer unmasked (x128) stores
            for cand in range(g + 1, 8 * g + 1):
                if (cand * E) % 128 == 0 and w_bytes(cand) <= _WEIGHT_BLOCK_CAP:
                    g = cand
                    break
    if g * K < 128:                           # lane-dense patches stream too
        m = -(-128 // (g * K))
        if w_bytes(g * m) <= _WEIGHT_BLOCK_CAP:
            g *= m
    return g


def _vmem_capacity_bytes():
    # v5e/v6e: 128 MiB VMEM per TensorCore; v7x: 64 MiB.  Fall back to the
    # smallest figure so the limit we request can never exceed physical VMEM.
    try:
        cap = getattr(pltpu.get_tpu_info(), "vmem_capacity_bytes", None)
        if cap:
            return int(cap)
    except Exception:
        pass
    return 64 << 20


def _round_down8(x):
    return max(8, (x // 8) * 8)


def _choose_tiles(M_pack, gK, N_total, in_b, out_b, w_b, vmem_budget,
                  target_step_bytes):
    """Pick (tm, tn, grid_m, grid_n, vmem_need) from byte budgets."""
    # Output column stripe: single stripe unless the packed embedding axis is
    # very wide (large E); ~1024 lanes bounds the out tile so tm can stay large
    # inside VMEM (especially on v7x's 64 MiB).
    tn = N_total if N_total <= 1536 else 1024

    # Rows per step from an HBM-traffic budget (in-tile + out-tile per step):
    # fat steps amortize the ~0.35 us grid-step cost on this bandwidth-bound
    # kernel (measured: ~29% -> ~85% of HBM roofline going tiny -> MiB tiles).
    row_bytes = gK * in_b + tn * out_b
    tm = max(8, target_step_bytes // row_bytes)
    if tm >= M_pack:
        tm = M_pack                      # full dim (exempt from /8 rule)
    else:
        tm = _round_down8(tm)

    def need(tm_, tn_):
        return (2 * tm_ * gK * in_b      # patches tiles (double buffered)
                + 2 * tm_ * tn_ * out_b  # output tiles  (double buffered)
                + tm_ * tn_ * 4          # f32 matmul/bias temporary
                + 2 * gK * tn_ * w_b     # weight stripe (double buffered)
                + 2 * tn_ * 4)           # bias stripe

    # Shrink tiles (never raise the limit past the per-generation budget).
    while tm > 8 and need(tm, tn) > vmem_budget:
        tm = _round_down8(tm // 2)
    while tn > 128 and need(tm, tn) > vmem_budget:
        tn = max(128, (tn // 2) // 128 * 128)

    grid_m = pl.cdiv(M_pack, tm)
    # Megacore / pipelining: prefer >= 8 M-steps (>= 4 per TensorCore) when the
    # problem is big enough that each step still moves plenty of bytes.
    if grid_m < 8:
        tm_alt = ((-(-M_pack // 8)) + 7) // 8 * 8
        if tm_alt * row_bytes >= (512 << 10) and 8 <= tm_alt < tm:
            tm = tm_alt
            grid_m = pl.cdiv(M_pack, tm)

    grid_n = pl.cdiv(N_total, tn)
    return tm, tn, grid_m, grid_n, need(tm, tn)


def patchify_projection(patches, w_mat, bias, *, out_dtype=jnp.float32,
                        target_step_bytes=8 << 20):
    """patches: (M, K), w_mat: (K, E), bias: (E,) f32  ->  (M, E) tokens."""
    M, K = patches.shape
    E = w_mat.shape[1]
    in_b = patches.dtype.itemsize
    w_b = w_mat.dtype.itemsize
    out_b = jnp.dtype(out_dtype).itemsize

    # --- token packing for lane density --------------------------------------
    g = _pack_factor(K, E, w_b)
    # Pad only to a multiple of g (needed for the free packed reshape); ragged
    # last M/N blocks are handled by the cdiv grid (OOB output rows/cols are
    # masked on store, garbage OOB input rows only feed discarded rows).
    M_g = -(-M // g) * g
    if M_g != M:
        patches = jnp.pad(patches, ((0, M_g - M), (0, 0)))
    M_pack = M_g // g
    gK, N_total = g * K, g * E
    p_packed = patches.reshape(M_pack, gK)               # free view of HBM

    # --- replicate weight / bias into the packed layout ----------------------
    w_bd = jnp.kron(jnp.eye(g, dtype=w_mat.dtype), w_mat)        # (g*K, g*E)
    b_tiled = jnp.tile(bias.astype(jnp.float32), g).reshape(1, N_total)

    # --- per-generation tile / VMEM sizing ------------------------------------
    vmem_cap = _vmem_capacity_bytes()
    tm, tn, grid_m, grid_n, need = _choose_tiles(
        M_pack, gK, N_total, in_b, out_b, w_b,
        vmem_budget=int(vmem_cap * 0.75),
        target_step_bytes=target_step_bytes)
    vmem_limit = None
    if need > (12 << 20):     # above v5e's 16 MiB default scoped limit (margin)
        vmem_limit = min(max(int(need * 1.25) + (2 << 20), 32 << 20),
                         int(vmem_cap * 0.9))

    # Weight stripe has a constant-in-i index map; when it is big, drop the
    # never-used second pipeline buffer (frees g^2-scaled VMEM, esp. on v7x).
    if gK * tn * w_b > (512 << 10):
        w_spec = pl.BlockSpec((gK, tn), lambda i, j: (0, j),
                              pipeline_mode=pl.Buffered(1))
    else:
        w_spec = pl.BlockSpec((gK, tn), lambda i, j: (0, j))

    out_packed = pl.pallas_call(
        _projection_kernel,
        out_shape=jax.ShapeDtypeStruct((M_pack, N_total), out_dtype),
        grid_spec=pltpu.PrefetchScalarGridSpec(
            num_scalar_prefetch=0,
            grid=(grid_m, grid_n),      # N innermost: patches DMA'd only once
            in_specs=[
                pl.BlockSpec((tm, gK), lambda i, j: (i, 0)),
                w_spec,
                pl.BlockSpec((1, tn), lambda i, j: (0, j)),
            ],
            out_specs=pl.BlockSpec((tm, tn), lambda i, j: (i, j)),
        ),
        compiler_params=pltpu.CompilerParams(
            dimension_semantics=("parallel", "parallel"),
            vmem_limit_bytes=vmem_limit,
        ),
    )(p_packed, w_bd, b_tiled)

    tokens = out_packed.reshape(M_g, E)                   # free unpack
    if M_g != M:
        tokens = tokens[:M]
    return tokens


def patchify_forward(x, weight, bias, patch_size, *, compute_dtype=jnp.bfloat16,
                     out_dtype=jnp.float32):
    """
    x:      (B, C, T, H, W)     -- NCTHW, PyTorch Conv3d input layout
    weight: (E, C, kt, kh, kw)  -- PyTorch Conv3d weight layout
    bias:   (E,)
    returns tokens (B, N, E), token order row-major over (T', H', W').
    """
    kt, kh, kw = patch_size
    B, C, T, H, W = x.shape
    E = weight.shape[0]
    Tp, Hp, Wp = T // kt, H // kh, W // kw
    N = Tp * Hp * Wp
    K = C * kt * kh * kw

    # Patch extraction: one XLA transpose pass over x (compute_dtype cast fused).
    # TODO(synk): fuse this NCTHW -> (tokens, K) reorder into the kernel (pl.ANY
    # input + strided DMAs, or channels-last layout) to remove the (M, K)
    # intermediate's HBM round-trip; no clean Mosaic lowering today.
    xp = x.reshape(B, C, Tp, kt, Hp, kh, Wp, kw)
    xp = xp.transpose(0, 2, 4, 6, 1, 3, 5, 7)            # (B,T',H',W',C,kt,kh,kw)
    patches = xp.reshape(B * N, K).astype(compute_dtype)

    w_mat = weight.reshape(E, K).T.astype(compute_dtype)  # (K, E)
    tokens_flat = patchify_projection(patches, w_mat, bias.astype(jnp.float32),
                                      out_dtype=out_dtype)
    return tokens_flat.reshape(B, N, E)


if __name__ == "__main__":
    # Small shapes consistent with the module: input_dim=4, embed_dim=32,
    # patch_size=(1, 2, 2), latent video (B, C, T, H, W) = (2, 4, 2, 16, 16).
    B, C, T, H, W = 2, 4, 2, 16, 16
    E = 32
    patch_size = (1, 2, 2)

    key = jax.random.PRNGKey(0)
    kx, kw_, kb = jax.random.split(key, 3)

    x = jax.random.normal(kx, (B, C, T, H, W), dtype=jnp.float32)
    fan_in = C * patch_size[0] * patch_size[1] * patch_size[2]
    bound = 1.0 / (fan_in ** 0.5)
    weight = jax.random.uniform(
        kw_, (E, C, *patch_size), minval=-bound, maxval=bound, dtype=jnp.float32
    )
    bias = jax.random.uniform(
        kb, (E,), minval=-bound, maxval=bound, dtype=jnp.float32
    )

    fwd = jax.jit(lambda xx, ww, bb: patchify_forward(xx, ww, bb, patch_size))
    tokens = jax.block_until_ready(fwd(x, weight, bias))

    # --- reference checks ----------------------------------------------------
    kt, kh, kw = patch_size
    Tp, Hp, Wp = T // kt, H // kh, W // kw
    xp = x.reshape(B, C, Tp, kt, Hp, kh, Wp, kw).transpose(0, 2, 4, 6, 1, 3, 5, 7)
    p_f32 = xp.reshape(B, Tp * Hp * Wp, -1)
    w_f32 = weight.reshape(E, -1).T
    ref_f32 = p_f32 @ w_f32 + bias
    # Kernel streams bf16 inputs with f32 accumulation: compare tightly against
    # a bf16-quantized-input reference, loosely against the pure f32 reference.
    ref_bf16 = (p_f32.astype(jnp.bfloat16).astype(jnp.float32)
                @ w_f32.astype(jnp.bfloat16).astype(jnp.float32)) + bias

    assert tokens.shape == (B, Tp * Hp * Wp, E)
    assert tokens.dtype == jnp.float32
    assert jnp.allclose(tokens, ref_bf16, atol=1e-4, rtol=1e-4)
    assert jnp.allclose(tokens, ref_f32, atol=1e-1, rtol=1e-1)

    # bf16 token output path (halves the dominant output writeback traffic).
    fwd_bf16 = jax.jit(lambda xx, ww, bb: patchify_forward(
        xx, ww, bb, patch_size, out_dtype=jnp.bfloat16))
    tokens_bf16 = jax.block_until_ready(fwd_bf16(x, weight, bias))
    assert tokens_bf16.dtype == jnp.bfloat16
    assert jnp.allclose(tokens_bf16.astype(jnp.float32), tokens,
                        atol=2e-2, rtol=2e-2)

    # Ragged / multi-step grid path: a tiny per-step byte budget forces tm < M
    # with a partial (masked) last block, exercising the cdiv-grid handling.
    M_sub = 200
    p_flat = p_f32.reshape(B * Tp * Hp * Wp, -1).astype(jnp.bfloat16)
    tokens_small = jax.block_until_ready(patchify_projection(
        p_flat[:M_sub], w_f32.astype(jnp.bfloat16), bias,
        target_step_bytes=16 << 10))
    assert tokens_small.shape == (M_sub, E)
    assert jnp.allclose(tokens_small, ref_bf16.reshape(-1, E)[:M_sub],
                        atol=1e-4, rtol=1e-4)

    print("KERNEL_OK")
</pallas_src>

<mosaic_0001>
module attributes {stable_mosaic.version = 11 : i64} {
  func.func @_projection_kernel(%arg0: i32, %arg1: i32, %arg2: memref<32x128xbf16, #tpu.memory_space<vmem>>, %arg3: memref<128x256xbf16, #tpu.memory_space<vmem>>, %arg4: memref<1x256xf32, #tpu.memory_space<vmem>>, %arg5: memref<32x256xf32, #tpu.memory_space<vmem>>) attributes {dimension_semantics = [#tpu.dimension_semantics<parallel>, #tpu.dimension_semantics<parallel>], iteration_bounds = array<i64: 1, 1>, scalar_prefetch = 0 : i64, scratch_operands = 0 : i64, tpu.core_type = #tpu.core_type<tc>, window_params = [{transform_indices = @transform_0, window_bounds = array<i64: 32, 128>}, {transform_indices = @transform_1, window_bounds = array<i64: 128, 256>}, {transform_indices = @transform_2, window_bounds = array<i64: 1, 256>}, {transform_indices = @transform_3, window_bounds = array<i64: 32, 256>}]} {
    %c0 = arith.constant 0 : index
    %c0_0 = arith.constant 0 : index
    %0 = vector.load %arg2[%c0, %c0_0] : memref<32x128xbf16, #tpu.memory_space<vmem>>, vector<32x128xbf16>
    %c0_1 = arith.constant 0 : index
    %c0_2 = arith.constant 0 : index
    %1 = vector.load %arg3[%c0_1, %c0_2] : memref<128x256xbf16, #tpu.memory_space<vmem>>, vector<128x256xbf16>
    %cst = arith.constant dense<0.000000e+00> : vector<32x256xf32>
    %2 = tpu.matmul %0, %1, %cst {dimension_numbers = #tpu.dot_dimension_numbers<[1], [0], [0], [1], [0, 0, 1, 1], [], []>} : vector<32x128xbf16>, vector<128x256xbf16>, vector<32x256xf32> -> vector<32x256xf32>
    %c0_3 = arith.constant 0 : index
    %c0_4 = arith.constant 0 : index
    %3 = vector.load %arg4[%c0_3, %c0_4] : memref<1x256xf32, #tpu.memory_space<vmem>>, vector<1x256xf32>
    %4 = vector.broadcast %3 : vector<1x256xf32> to vector<32x256xf32>
    %5 = arith.addf %2, %4 : vector<32x256xf32>
    %c0_5 = arith.constant 0 : index
    %c0_6 = arith.constant 0 : index
    %6 = vector.load %arg5[%c0_5, %c0_6] : memref<32x256xf32, #tpu.memory_space<vmem>>, vector<32x256xf32>
    tpu.vector_store %arg5[%c0_5, %c0_6], %5 {strides = array<i32>} : memref<32x256xf32, #tpu.memory_space<vmem>>, vector<32x256xf32>,
    return
  }
  func.func @transform_0(%arg0: i32, %arg1: i32) -> (i32, i32) {
    %c0_i32 = arith.constant 0 : i32
    %c0_i32_0 = arith.constant 0 : i32
    return %arg0, %c0_i32 : i32, i32
  }
  func.func @transform_1(%arg0: i32, %arg1: i32) -> (i32, i32) {
    %c0_i32 = arith.constant 0 : i32
    %c0_i32_0 = arith.constant 0 : i32
    return %c0_i32, %arg1 : i32, i32
  }
  func.func @transform_2(%arg0: i32, %arg1: i32) -> (i32, i32) {
    %c0_i32 = arith.constant 0 : i32
    %c0_i32_0 = arith.constant 0 : i32
    return %c0_i32, %arg1 : i32, i32
  }
  func.func @transform_3(%arg0: i32, %arg1: i32) -> (i32, i32) {
    %c0_i32 = arith.constant 0 : i32
    return %arg0, %arg1 : i32, i32
  }
}

</mosaic_0001>

<bundles_post_ra>
// kernel: tile.8
= control target key start
LH: loop header
LB: loop body
LE: loop exit
PB: predicated region body
PF: predicated region fallthrough
CT: control target
= control target key end

     0   :  { %s22_s0 = inlined_call_operand.vmem [shape: f32[32], index: 0, kind: input, shape index: {}]   ;;  %s23_s1 = inlined_call_operand.vmem [shape: f32[8,32], index: 1, kind: output, shape index: {}]  }
   0x1   :  { %v4_v0 = vld [vmem:[%s22_s0] ss:$0 sm:$0xff] }
   0x2   :  { %5 = vst [vmem:[%s23_s1] sm:$0xff] %v4_v0 }

// kernel: tile.9
= control target key start
LH: loop header
LB: loop body
LE: loop exit
PB: predicated region body
PF: predicated region fallthrough
CT: control target
= control target key end

     0   :  { %s7_s6 = smov 3  ;;  %s46_s9 = smov 96   ;;  %vm4_vm0 = vcmask 261120   ;;  %vm11_vm1 = vcmask 1048320   ;;  %vm18_vm2 = vcmask 785920   ;;  %vm25_vm3 = vcmask 523520   ;;  %s77_s0 = inlined_call_operand.vmem [shape: f32[8,32], index: 0, kind: input, shape index: {}]   ;;  %s78_s1 = inlined_call_operand.vmem [shape: f32[1,256], index: 1, kind: output, shape index: {}]  }
   0x1   :  { %v39_v0 = vld [vmem:[%s77_s0 + $0x3] ss:$4 sm:%s7_s6]   ;;  %s21_s10 = smov 3  ;;  %s14_s13 = smov 3 }
   0x2   :  { %9 = vrot.lane.b32.xlu0 %v39_v0, %s46_s9  ;;  %v41_v1 = vld [vmem:[%s77_s0 + $0x1] ss:$4 sm:%s21_s10]   ;;  %s47_s14 = smov 32   ;;  %s48_s17 = smov 64  }
   0x3   :  { %23 = vrot.lane.b32.xlu1 %v41_v1, %s47_s14  ;;  %v40_v2 = vld [vmem:[%s77_s0 + $0x2] ss:$4 sm:%s14_s13]   ;;  %s2_s18 = smov 3 }
   0x4   :  { %v3_v3 = vld [vmem:[%s77_s0] ss:$4 sm:%s2_s18]  }
   0x5   :  { %5 = vst.msk [vmem:[#allocation0] ss:$8 sm:$0x3] %vm4_vm0, %v3_v3  }
   0xa   :  { %16 = vrot.lane.b32.xlu0 %v40_v2, %s48_s17 }
  0x74   :  { %v10_v4 = vpop.permute.xlu0 %9  }
  0x75   :  { %12 = vst.msk [vmem:[#allocation0] ss:$8 sm:$0x3] %vm11_vm1, %v10_v4   ;;  %v24_v5 = vpop.permute.xlu1 %23  }
  0x7c   :  { %v17_v6 = vpop.permute.xlu0 %16  }
  0x7d   :  { %19 = vst.msk [vmem:[#allocation0] ss:$8 sm:$0x3] %vm18_vm2, %v17_v6  }
  0x7e   :  { %26 = vst.msk [vmem:[#allocation0] ss:$8 sm:$0x3] %vm25_vm3, %v24_v5  }
  0x85   :  { %v29_v7 = vld [vmem:[#allocation0] sm:$0x1]  ;;  %v34_v8 = vld [vmem:[#allocation0 + $0x8] sm:$0x1] }
  0x86   :  { %32 = vst [vmem:[%s78_s1] sm:$0x1] %v29_v7 }
  0x87   :  { %42 = vst [vmem:[%s78_s1 + $0x1] sm:$0x1] %v34_v8 }

// kernel: _lambda_.1
= control target key start
LH: loop header
LB: loop body
LE: loop exit
PB: predicated region body
PF: predicated region fallthrough
CT: control target
= control target key end

     0   :  { %s437_s1 = inlined_call_operand.vmem [shape: bf16[128,256], index: 1, kind: input, shape index: {}]   ;;  %s438_s0 = inlined_call_operand.vmem [shape: bf16[32,128], index: 0, kind: input, shape index: {}]   ;;  %s439_s2 = inlined_call_operand.vmem [shape: f32[1,256], index: 2, kind: input, shape index: {}]   ;;  %s440_s3 = inlined_call_operand.vmem [shape: f32[32,256], index: 3, kind: output, shape index: {}]  }
   0x1   :  { %v248_v0 = vld [vmem:[%s437_s1 + $0x70] sm:$0xf]  ;;  %v271_v1 = vld [vmem:[%s437_s1 + $0x74] sm:$0xf0]  ;;  %v270_v2 = vld [vmem:[%s437_s1 + $0x74] sm:$0xf] }
   0x2   :  { %v249_v3 = vor.u32 %v271_v1, %v248_v0  ;;  %v250_v4 = vld [vmem:[%s437_s1 + $0x78] sm:$0xf0]  ;;  %v240_v5 = vld [vmem:[%s437_s1 + $0x60] sm:$0xf]  ;;  %v269_v6 = vld [vmem:[%s437_s1 + $0x64] sm:$0xf0] }
   0x3   :  { %v253_v7 = vor.u32 %v270_v2, %v250_v4  ;;  %v268_v8 = vld [vmem:[%s437_s1 + $0x64] sm:$0xf]  ;;  %v242_v9 = vld [vmem:[%s437_s1 + $0x68] sm:$0xf0]  ;;  %v241_v10 = vor.u32 %v269_v6, %v240_v5  ;;  %v232_v12 = vld [vmem:[%s437_s1 + $0x50] sm:$0xf] }
   0x4   :  { %132 = vmatpush.bf16.msra.mxu0 %v249_v3  ;;  %272 = vmatpush.bf16.msra.mxu2 %v249_v3  ;;  %v245_v11 = vor.u32 %v268_v8, %v242_v9  ;;  %v267_v13 = vld [vmem:[%s437_s1 + $0x54] sm:$0xf0]  ;;  %v266_v14 = vld [vmem:[%s437_s1 + $0x54] sm:$0xf]  ;;  %v234_v15 = vld [vmem:[%s437_s1 + $0x58] sm:$0xf0] }
   0x5   :  { %151 = vmatpush.bf16.msra.mxu1 %v253_v7  ;;  %280 = vmatpush.bf16.msra.mxu3 %v253_v7  ;;  %v233_v16 = vor.u32 %v267_v13, %v232_v12  ;;  %v237_v17 = vor.u32 %v266_v14, %v234_v15  ;;  %v224_v18 = vld [vmem:[%s437_s1 + $0x40] sm:$0xf]  ;;  %v265_v19 = vld [vmem:[%s437_s1 + $0x44] sm:$0xf0]  ;;  %v264_v20 = vld [vmem:[%s437_s1 + $0x44] sm:$0xf] }
   0x6   :  { %v226_v21 = vld [vmem:[%s437_s1 + $0x48] sm:$0xf0]  ;;  %v225_v22 = vor.u32 %v265_v19, %v224_v18  ;;  %v216_v24 = vld [vmem:[%s437_s1 + $0x30] sm:$0xf]  ;;  %v263_v25 = vld [vmem:[%s437_s1 + $0x34] sm:$0xf0] }
   0x7   :  { %v229_v23 = vor.u32 %v264_v20, %v226_v21  ;;  %v262_v26 = vld [vmem:[%s437_s1 + $0x34] sm:$0xf]  ;;  %v218_v27 = vld [vmem:[%s437_s1 + $0x38] sm:$0xf0]  ;;  %v217_v28 = vor.u32 %v263_v25, %v216_v24  ;;  %v208_v30 = vld [vmem:[%s437_s1 + $0x20] sm:$0xf] }
   0x8   :  { %133 = vmatpush.bf16.msra.mxu0 %v241_v10  ;;  %273 = vmatpush.bf16.msra.mxu2 %v241_v10  ;;  %v221_v29 = vor.u32 %v262_v26, %v218_v27  ;;  %v261_v31 = vld [vmem:[%s437_s1 + $0x24] sm:$0xf0]  ;;  %v260_v32 = vld [vmem:[%s437_s1 + $0x24] sm:$0xf]  ;;  %v210_v33 = vld [vmem:[%s437_s1 + $0x28] sm:$0xf0] }
   0x9   :  { %152 = vmatpush.bf16.msra.mxu1 %v245_v11  ;;  %281 = vmatpush.bf16.msra.mxu3 %v245_v11  ;;  %v209_v34 = vor.u32 %v261_v31, %v208_v30  ;;  %v213_v35 = vor.u32 %v260_v32, %v210_v33  ;;  %v200_v36 = vld [vmem:[%s437_s1 + $0x10] sm:$0xf]  ;;  %v259_v37 = vld [vmem:[%s437_s1 + $0x14] sm:$0xf0]  ;;  %v258_v38 = vld [vmem:[%s437_s1 + $0x14] sm:$0xf] }
   0xa   :  { %v202_v39 = vld [vmem:[%s437_s1 + $0x18] sm:$0xf0]  ;;  %v201_v40 = vor.u32 %v259_v37, %v200_v36  ;;  %v192_v42 = vld [vmem:[%s437_s1] sm:$0xf]  ;;  %v257_v43 = vld [vmem:[%s437_s1 + $0x4] sm:$0xf0] }
   0xb   :  { %v205_v41 = vor.u32 %v258_v38, %v202_v39  ;;  %v256_v44 = vld [vmem:[%s437_s1 + $0x4] sm:$0xf]  ;;  %v194_v45 = vld [vmem:[%s437_s1 + $0x8] sm:$0xf0]  ;;  %v193_v46 = vor.u32 %v257_v43, %v192_v42  ;;  %v34_v50 = vld [vmem:[%s439_s2] sm:$0x3] }
   0xc   :  { %134 = vmatpush.bf16.msra.mxu0 %v233_v16  ;;  %274 = vmatpush.bf16.msra.mxu2 %v233_v16  ;;  %v197_v47 = vor.u32 %v256_v44, %v194_v45  ;;  %v254_v48 = vld [vmem:[%s438_s0] sm:$0xff]  ;;  %v255_v49 = vld [vmem:[%s438_s0 + $0x8] sm:$0xff]  ;;  %v36_v51 = vperm.slane %v34_v50, 0  ;;  %v37_v52 = vperm.slane %v34_v50, 1 }
   0xd   :  { %153 = vmatpush.bf16.msra.mxu1 %v237_v17  ;;  %282 = vmatpush.bf16.msra.mxu3 %v237_v17 }
  0x10   :  { %135 = vmatpush.bf16.msra.mxu0 %v225_v22  ;;  %275 = vmatpush.bf16.msra.mxu2 %v225_v22 }
  0x11   :  { %154 = vmatpush.bf16.msra.mxu1 %v229_v23  ;;  %283 = vmatpush.bf16.msra.mxu3 %v229_v23 }
  0x14   :  { %136 = vmatpush.bf16.msra.mxu0 %v217_v28  ;;  %276 = vmatpush.bf16.msra.mxu2 %v217_v28 }
  0x15   :  { %155 = vmatpush.bf16.msra.mxu1 %v221_v29  ;;  %284 = vmatpush.bf16.msra.mxu3 %v221_v29 }
  0x18   :  { %137 = vmatpush.bf16.msra.mxu0 %v209_v34  ;;  %277 = vmatpush.bf16.msra.mxu2 %v209_v34 }
  0x19   :  { %156 = vmatpush.bf16.msra.mxu1 %v213_v35  ;;  %285 = vmatpush.bf16.msra.mxu3 %v213_v35 }
  0x1c   :  { %138 = vmatpush.bf16.msra.mxu0 %v201_v40  ;;  %278 = vmatpush.bf16.msra.mxu2 %v201_v40 }
  0x1d   :  { %157 = vmatpush.bf16.msra.mxu1 %v205_v41  ;;  %286 = vmatpush.bf16.msra.mxu3 %v205_v41 }
  0x20   :  { %139 = vmatpush.bf16.msra.mxu0 %v193_v46  ;;  %279 = vmatpush.bf16.msra.mxu2 %v193_v46 }
  0x21   :  { %158 = vmatpush.bf16.msra.mxu1 %v197_v47  ;;  %287 = vmatpush.bf16.msra.mxu3 %v197_v47 }
  0x23   :  { %140 = vmatmul.bf16.vlgmr.msra.gmra.mxu0 %v254_v48  ;;  %145 = vmatmul.bf16.vlgmr.msra.gmra.mxu2 %v255_v49 }
  0x24   :  { %159 = vmatmul.bf16.vlgmr.msra.gmra.mxu1 %v254_v48  ;;  %164 = vmatmul.bf16.vlgmr.msra.gmra.mxu3 %v255_v49 }
  0xa0   :  { %v141_v53 = vpop.f32.mrf.mxu0 }
  0xa1   :  { %v142_v54 = vadd.f32 %v141_v53, %v36_v51  ;;  %v160_v55 = vpop.f32.mrf.mxu1 }
  0xa2   :  { %v161_v56 = vadd.f32 %v160_v55, %v37_v52 }
  0xa3   :  { %170 = vst [vmem:[%s440_s3] sm:$0xff] %v142_v54 }
  0xa4   :  { %171 = vst [vmem:[%s440_s3 + $0x8] sm:$0xff] %v161_v56 }
  0xa6   :  { %v146_v57 = vpop.f32.mrf.mxu2 }
  0xa7   :  { %v147_v58 = vadd.f32 %v146_v57, %v36_v51  ;;  %v165_v59 = vpop.f32.mrf.mxu3 }
  0xa8   :  { %v166_v60 = vadd.f32 %v165_v59, %v37_v52  ;;  %v143_v61 = vpop.f32.mrf.mxu0 }
  0xa9   :  { %174 = vst [vmem:[%s440_s3 + $0x20] sm:$0xff] %v147_v58  ;;  %v144_v62 = vadd.f32 %v143_v61, %v36_v51  ;;  %v162_v63 = vpop.f32.mrf.mxu1 }
  0xaa   :  { %175 = vst [vmem:[%s440_s3 + $0x28] sm:$0xff] %v166_v60  ;;  %v163_v0 = vadd.f32 %v162_v63, %v37_v52 }
  0xab   :  { %172 = vst [vmem:[%s440_s3 + $0x10] sm:$0xff] %v144_v62 }
  0xac   :  { %173 = vst [vmem:[%s440_s3 + $0x18] sm:$0xff] %v163_v0 }
  0xae   :  { %v148_v1 = vpop.f32.mrf.mxu2 }
  0xaf   :  { %v149_v2 = vadd.f32 %v148_v1, %v36_v51  ;;  %v167_v3 = vpop.f32.mrf.mxu3 }
  0xb0   :  { %v168_v4 = vadd.f32 %v167_v3, %v37_v52 }
  0xb1   :  { %176 = vst [vmem:[%s440_s3 + $0x30] sm:$0xff] %v149_v2 }
  0xb2   :  { %177 = vst [vmem:[%s440_s3 + $0x38] sm:$0xff] %v168_v4 }

</bundles_post_ra>
